<compile_context>
chip_gen: v6e
topology: v6e:2x2x1
jax: 0.10.0
libtpu: 0.0.40
codegen_flags: <defaults>
</compile_context>

<pallas_src>
import jax
import jax.numpy as jnp
from jax.experimental import pallas as pl
from jax.experimental.pallas import tpu as pltpu


def _clip_kernel(x_ref, o_ref):
    # Elementwise clamp to [-1, 1]; trimming is handled by grid/out_shape.
    o_ref[...] = jnp.clip(x_ref[...], -1.0, 1.0)


def _round_up(x: int, m: int) -> int:
    return ((x + m - 1) // m) * m


def _sublane_quantum(itemsize: int) -> int:
    """Rows per (sublane-packed) VMEM tile row-group for a given itemsize."""
    return {4: 8, 2: 16, 1: 32}.get(itemsize, 8)


# Budget for the 4 live pipeline tiles (2x input + 2x output, double-buffered),
# measured in *padded* VMEM bytes.  Kept well under the explicit vmem limit.
_BUFFER_BUDGET_BYTES = 24 << 20
# Explicit scoped-VMEM limit: above v5e's 16 MiB default, below v7x's 64 MiB
# physical per-TensorCore capacity.
_VMEM_LIMIT_BYTES = 48 << 20
# Aim for ~4 MiB of real (unpadded) data per tile to amortize ~0.35 us/step.
_TARGET_ACTUAL_BYTES = 4 << 20
# Keep >= 8 grid steps when the clip is long enough (>= 4 per TC on v7x).
_MIN_GRID_STEPS = 8


def _choose_tile_lanes(rows: int, length: int, itemsize: int) -> int:
    """Lane-dense tile width (multiple of 128), VMEM-padding aware."""
    padded_rows = _round_up(rows, _sublane_quantum(itemsize))

    # 2 input + 2 output buffers live at once; each occupies padded_rows rows.
    live_bytes_per_lane = 4 * padded_rows * itemsize
    lanes_budget = max(
        128, (_BUFFER_BUDGET_BYTES // live_bytes_per_lane) // 128 * 128)

    # ~4 MiB of actual HBM data per tile is enough to sit near roofline.
    lanes_target = max(
        128, (_TARGET_ACTUAL_BYTES // max(1, rows * itemsize)) // 128 * 128)

    # Guarantee a reasonably deep grid (megacore split + pipeline overlap).
    lanes_steps = max(128, _round_up(pl.cdiv(length, _MIN_GRID_STEPS), 128))

    # Never larger than what the (128-rounded) output actually needs.
    return min(lanes_budget, lanes_target, lanes_steps, _round_up(length, 128))


def audio_post_process(audio: jax.Array, original_length: int) -> jax.Array:
    """
    Pallas equivalent of AudioPostProcessor.forward.

    Args:
        audio: [batch, 1, samples] float array (padded).
        original_length: static int, original audio length before padding.

    Returns:
        [batch, 1, original_length] array, clamped to [-1, 1].
    """
    b, c, s = audio.shape
    assert 0 < original_length <= s, "original_length must not exceed padded length"

    rows = b * c
    # Collapse the size-1 channel axis: [b, 1, s] -> [b*c, s] (free reshape).
    x2d = audio.reshape(rows, s)
    itemsize = x2d.dtype.itemsize

    tile = _choose_tile_lanes(rows, original_length, itemsize)
    grid = (pl.cdiv(original_length, tile),)

    cost = pl.CostEstimate(
        flops=0,
        transcendentals=0,
        bytes_accessed=2 * rows * original_length * itemsize,
    )

    out2d = pl.pallas_call(
        _clip_kernel,
        out_shape=jax.ShapeDtypeStruct((rows, original_length), audio.dtype),
        grid=grid,
        # Block last dim is a multiple of 128 (lane-dense); rows dim equals the
        # full array dim, so the (8,128) constraint is satisfied.  The tail
        # tile (if original_length % tile != 0) is masked by Pallas.
        in_specs=[pl.BlockSpec((rows, tile), lambda i: (0, i))],
        out_specs=pl.BlockSpec((rows, tile), lambda i: (0, i)),
        compiler_params=pltpu.CompilerParams(
            dimension_semantics=("parallel",),
            vmem_limit_bytes=_VMEM_LIMIT_BYTES,
        ),
        cost_estimate=cost,
    )(x2d)

    return out2d.reshape(b, c, original_length)


if __name__ == "__main__":
    key = jax.random.PRNGKey(0)
    k1, k2 = jax.random.split(key)

    # Case 1: small clip, single/few grid steps, non-multiple-of-128 trim.
    batch, channels, samples = 2, 1, 256
    original_length = 200
    audio = 2.0 * jax.random.normal(
        k1, (batch, channels, samples), dtype=jnp.float32)
    result = jax.block_until_ready(audio_post_process(audio, original_length))
    ref = jnp.clip(audio[:, :, :original_length], -1.0, 1.0)
    assert result.shape == (batch, channels, original_length)
    assert jnp.allclose(result, ref), "mismatch vs reference (case 1)"

    # Case 2: longer clip exercising a multi-step grid + masked tail tile.
    batch2, samples2, original_length2 = 2, 2048, 1900
    audio2 = 2.0 * jax.random.normal(
        k2, (batch2, 1, samples2), dtype=jnp.float32)
    result2 = jax.block_until_ready(audio_post_process(audio2, original_length2))
    ref2 = jnp.clip(audio2[:, :, :original_length2], -1.0, 1.0)
    assert result2.shape == (batch2, 1, original_length2)
    assert jnp.allclose(result2, ref2), "mismatch vs reference (case 2)"

    print("KERNEL_OK")
</pallas_src>

<mosaic_0001>
module attributes {stable_mosaic.version = 11 : i64} {
  func.func @_clip_kernel(%arg0: i32, %arg1: memref<2x128xf32, #tpu.memory_space<vmem>>, %arg2: memref<2x128xf32, #tpu.memory_space<vmem>>) attributes {dimension_semantics = [#tpu.dimension_semantics<parallel>], iteration_bounds = array<i64: 2>, scalar_prefetch = 0 : i64, scratch_operands = 0 : i64, tpu.core_type = #tpu.core_type<tc>, window_params = [{transform_indices = @transform_0, window_bounds = array<i64: 2, 128>}, {transform_indices = @transform_1, window_bounds = array<i64: 2, 128>}]} {
    %c0 = arith.constant 0 : index
    %c0_0 = arith.constant 0 : index
    %0 = vector.load %arg1[%c0, %c0_0] : memref<2x128xf32, #tpu.memory_space<vmem>>, vector<2x128xf32>
    %cst = arith.constant -1.000000e+00 : f32
    %cst_1 = arith.constant 1.000000e+00 : f32
    %1 = vector.broadcast %cst : f32 to vector<2x128xf32>
    %2 = arith.maximumf %1, %0 : vector<2x128xf32>
    %3 = vector.broadcast %cst_1 : f32 to vector<2x128xf32>
    %4 = arith.minimumf %3, %2 : vector<2x128xf32>
    %c0_2 = arith.constant 0 : index
    %c0_3 = arith.constant 0 : index
    %5 = vector.load %arg2[%c0_2, %c0_3] : memref<2x128xf32, #tpu.memory_space<vmem>>, vector<2x128xf32>
    tpu.vector_store %arg2[%c0_2, %c0_3], %4 {strides = array<i32>} : memref<2x128xf32, #tpu.memory_space<vmem>>, vector<2x128xf32>,
    return
  }
  func.func @transform_0(%arg0: i32) -> (i32, i32) {
    %c0_i32 = arith.constant 0 : i32
    %c0_i32_0 = arith.constant 0 : i32
    return %c0_i32, %arg0 : i32, i32
  }
  func.func @transform_1(%arg0: i32) -> (i32, i32) {
    %c0_i32 = arith.constant 0 : i32
    %c0_i32_0 = arith.constant 0 : i32
    return %c0_i32, %arg0 : i32, i32
  }
}

</mosaic_0001>

<bundles_post_ra>
// kernel: tpu_custom_call.1
= control target key start
LH: loop header
LB: loop body
LE: loop exit
PB: predicated region body
PF: predicated region fallthrough
CT: control target
= control target key end

     0   :  { %6 = vsyncpa [#allocation3], 0  ;;  %s526_s0 = inlined_call_operand.hbm [shape: f32[2,256], index: 0, kind: input, shape index: {}]   ;;  %s527_s1 = inlined_call_operand.hbm [shape: f32[2,200], index: 1, kind: output, shape index: {}]  }
   0x1   :  { %8 = vsyncpa [#allocation3 + $0x1], 0 }
   0x2   :  { %9 = vsyncpa [#allocation4], 0 }
   0x3   :  { %11 = vsyncpa [#allocation4 + $0x1], 0  ;;  %s385_s6 = smov 0   ;;  %s387_s7 = smov 0  }
   0x4   :  { %s389_s8 = smov 0   ;;  %s391_s9 = smov 0  }
   0x5 LB: > { %s406_s10 = sadd.s32 4294967295, %s371_s9   ;;  %s220_s11 = sadd.s32 4294967294, %s371_s9   ;;  %s371_s9 = sphi %s391_s9, %s544_s9   ;;  %s367_s8 = sphi %s389_s8, %s543_s8   ;;  %s363_s7 = sphi %s387_s7, %s542_s7   ;;  %s359_s6 = sphi %s385_s6, %s541_s6  }
   0x6   : > { %s410_s12 = sadd.s32 1, %s371_s9   ;;  %s24_s13 = sadd.s32 1, %s367_s8 }
   0x7   : > { %s21_s14 = ssub.s32 %s371_s9, %s410_s12  ;;  %p31_p0 = scmp.ne.s32.totalorder %s367_s8, %s363_s7 }
   0x8   : > { %p22_p1 = scmp.eq.s32.totalorder %s21_s14, 0  ;;  %p32_p2 = scmp.eq.s32.totalorder %s371_s9, 0 }
   0x9   : > { %p37_p3 = scmp.ne.s32.totalorder %s363_s7, %s359_s6  ;;  %p38_p4 = scmp.eq.s32.totalorder %s406_s10, 0 }
   0xa   : > { %s422_s15 = scalar_select %p22_p1, %s367_s8, %s24_s13  }
   0xb   : > { %p424_p5 = por %p32_p2, %p31_p0  ;;  %p428_p6 = por %p38_p4, %p37_p3 }
   0xc   : > { %p61_p7 = scmp.eq.s32.totalorder %s406_s10, 1  ;;  %p67_p8 = scmp.eq.s32.totalorder %s220_s11, 1 }
   0xd   : > { %s531_s17 = scalar_select %p428_p6, 1, 0 }
   0xe   : > { %p245_p10 = scmp.lt.s32.totalorder %s371_s9, 2  ;;  %p435_p11 = por %p61_p7, %p31_p0 }
   0xf   : > { %p439_p12 = por %p67_p8, %p37_p3  ;;  %s87_s20 = sand.u32 1, %s367_s8  }
  0x10   : > { %s532_s18 = scalar_select %p435_p11, 1, 0 }
  0x11   : > { %s533_s19 = scalar_select %p439_p12, 1, 0 }
  0x12   : > { %s224_s21 = sshll.u32 %s371_s9, 5  ;;  %s223_s22 = sshll.u32 %s87_s20, 1 }
  0x13   : > { %s448_s25 = scalar_lea.hbm %s526_s0, %s224_s21  ;;  %s91_s26 = scalar_lea.vmem [#allocation2], %s223_s22 }
  0x14   : > { %s98_s27 = sshll.u32 %s91_s26, 4  ;;  %p452_p13 = pnand %p245_p10, %p424_p5  ;;  %s456_s27 = int_to_ptr.vmem [resolvable:$true] %s98_s27 }
  0x15   : > { %s88_s29 = scalar_lea.sflag [#allocation3], %s87_s20  ;;  %s279_s30 = scalar_lea.hbm %s448_s25, 32 }
  0x16   : > { %p280_p2 = scmp.ne.s32.totalorder %s448_s25, %s279_s30  ;;  %p281_p3 = pneg %p452_p13 }
  0x17   : > { %s284_s4 = scalar_lea.hbm %s526_s0, 64  ;;  %p285_p5 = scmp.lt.s32.totalorder %s448_s25, %s526_s0 }
  0x18   : > { %p282_p4 = pnand %p281_p3, %p280_p2  ;;  %p286_p8 = scmp.lt.s32.totalorder %s284_s4, %s279_s30 }
  0x1a   : > { %p283_p7 = pneg %p282_p4  ;;  %p287_p10 = por %p286_p8, %p285_p5 }
  0x1c   : > { %p288_p9 = pnand %p287_p10, %p283_p7 }
  0x1e   : > { %291 = shalt.err (!%p288_p9)
}
  0x1f   : > { %s292_s13 = scalar_lea.vmem %s456_s27, 32  ;;  %s373_s14 = smov [#allocation2]  }
  0x20   : > { %p293_p0 = scmp.ne.s32.totalorder %s456_s27, %s292_s13  ;;  %s297_s16 = sshll.u32 %s373_s14, 4  ;;  %s298_s16 = int_to_ptr.vmem [resolvable:$false] %s297_s16 }
  0x21   : > { %s299_s20 = scalar_lea.vmem %s298_s16, 64  ;;  %p300_p4 = scmp.lt.s32.totalorder %s456_s27, %s298_s16 }
  0x22   : > { %p295_p1 = pnand %p293_p0, %p281_p3  ;;  %p301_p12 = scmp.lt.s32.totalorder %s299_s20, %s292_s13 }
  0x24   : > { %p296_p2 = pneg %p295_p1  ;;  %p302_p11 = por %p301_p12, %p300_p4 }
  0x26   : > { %p303_p6 = pnand %p302_p11, %p296_p2 }
  0x28   : > { %306 = shalt.err (!%p303_p6)
}
  0x29   : > { %240 = dma.hbm_to_vmem [thread:$0]  (!%p452_p13), %s448_s25, 32, %s456_s27, %s88_s29  }
  0x2a   : > { %p535_p9 = scmp.lt.s32.totalorder %s371_s9, 3  ;;  %p536_p7 = scmp.ge.s32.totalorder %s371_s9, 1 }
  0x2c   : > { %p104_p0 = pnand %p536_p7, %p535_p9 }
  0x2d   : > { %s483_s21 = sand.u32 (!%p104_p0), 1, %s363_s7   ;;  %p537_p6 = scmp.ne.s32.totalorder (!%p104_p0), %s531_s17, 0 }
  0x2e   : > { %107 = sbr.rel (%p104_p0) target bundleno = 77 (0x4d), region = 24  ;;  %s226_s22 = sshll.u32 (!%p104_p0), %s483_s21, 1 }
  0x2f   : > { %s110_s23 = scalar_lea.sflag (!%p104_p0), [#allocation3], %s483_s21  ;;  %s113_s24 = scalar_lea.vmem (!%p104_p0), [#allocation2], %s226_s22 }
  0x33   : > { %350 = dma.done.wait (%p537_p6), %s110_s23, 32  }
  0x34   : > { %352 = vsyncadd (%p537_p6), %s110_s23, 4294967264  ;;  %s131_s25 = scalar_lea.vmem [#allocation5], %s226_s22  ;;  %s230_s27 = sshll.u32 %s406_s10, 5  ;;  %v132_v0 = vld [vmem:[%s113_s24] sm:$0x3] }
  0x35   : > { %s150_s26 = sshll.u32 %s131_s25, 4  ;;  %v228_v1 = vclamps-f32 %v132_v0, 1.0  ;;  %s148_s30 = scalar_lea.hbm %s527_s1, %s230_s27  ;;  %s151_s26 = int_to_ptr.vmem [resolvable:$true] %s150_s26 }
  0x36   : > { %s137_s2 = scalar_lea.sflag [#allocation4], %s483_s21  ;;  %s307_s3 = scalar_lea.vmem %s151_s26, 32 }
  0x37   : > { %135 = vst [vmem:[%s131_s25] sm:$0x3] %v228_v1  ;;  %p308_p11 = scmp.ne.s32.totalorder %s151_s26, %s307_s3  ;;  %p538_p12 = scmp.ne.s32.totalorder %s532_s18, 0 }
  0x38   : > { %s374_s17 = smov [#allocation5]  }
  0x39   : > { %p309_p13 = pnand %p308_p11, %p538_p12  ;;  %s311_s4 = sshll.u32 %s374_s17, 4  ;;  %s312_s4 = int_to_ptr.vmem [resolvable:$false] %s311_s4 }
  0x3a   : > { %s313_s5 = scalar_lea.vmem %s312_s4, 64  ;;  %p314_p3 = scmp.lt.s32.totalorder %s151_s26, %s312_s4 }
  0x3b   : > { %p310_p1 = pneg %p309_p13  ;;  %p315_p5 = scmp.lt.s32.totalorder %s313_s5, %s307_s3 }
  0x3d   : > { %p316_p8 = por %p315_p5, %p314_p3 }
  0x3f   : > { %p317_p10 = pnand %p316_p8, %p310_p1 }
  0x41   : > { %320 = shalt.err (!%p317_p10)
}
  0x42   : > { %s321_s10 = scalar_lea.hbm %s148_s30, 32  ;;  %s325_s14 = scalar_lea.hbm %s527_s1, 64 }
  0x43   : > { %p322_p2 = scmp.ne.s32.totalorder %s148_s30, %s321_s10  ;;  %p326_p7 = scmp.lt.s32.totalorder %s148_s30, %s527_s1 }
  0x44   : > { %p327_p0 = scmp.lt.s32.totalorder %s325_s14, %s321_s10 }
  0x45   : > { %p323_p4 = pnand %p322_p2, %p538_p12 }
  0x46   : > { %p328_p6 = por %p327_p0, %p326_p7 }
  0x47   : > { %p324_p9 = pneg %p323_p4 }
  0x49   : > { %p329_p11 = pnand %p328_p6, %p324_p9 }
  0x4b   : > { %332 = shalt.err (!%p329_p11)
}
  0x4c   : > { %235 = dma.vmem_to_hbm [thread:$0]  (%p538_p12), %s151_s26, 32, %s148_s30, %s137_s2  }
  0x4d PF: > { %s162_s21 = sand.u32 1, %s359_s6   ;;  %p539_p13 = scmp.ne.s32.totalorder %s533_s19, 0 }
  0x4e   : > { %p540_p1 = scmp.ge.s32.totalorder %s371_s9, 2  ;;  %s163_s22 = scalar_lea.sflag [#allocation4], %s162_s21 }
  0x50   : > { %p242_p3 = pnand %p540_p1, %p539_p13 }
  0x52   : > { %p243_p5 = pneg %p242_p3 }
  0x54   : > { %354 = dma.done.wait (%p243_p5), %s163_s22, 32  }
  0x55   : > { %356 = vsyncadd (%p243_p5), %s163_s22, 4294967264  ;;  %p14_p8 = scmp.ge.s32.totalorder %s410_s12, 4   ;;  %s541_s6 = smov %s363_s7 }
  0x56   : > { %s542_s7 = smov %s367_s8  ;;  %s543_s8 = smov %s422_s15 }
  0x57   : > { %s544_s9 = smov %s410_s12  ;;  %16 = sbr.rel (!%p14_p8) target bundleno = 5 (0x5), region = 69 }
  0x5c   :  { %168 = vsyncpa [#allocation3], 1 }
  0x5d   :  { %170 = vsyncpa [#allocation3 + $0x1], 1 }
  0x5e   :  { %171 = vsyncpa [#allocation4], 1 }
  0x5f   :  { %173 = vsyncpa [#allocation4 + $0x1], 1 }

</bundles_post_ra>
